<compile_context>
chip_gen: v7x
topology: tpu7x:2x2x1
jax: 0.10.0
libtpu: 0.0.40
codegen_flags: <defaults>
</compile_context>

<pallas_src>
import jax
import jax.numpy as jnp
from jax.experimental import pallas as pl
from jax.experimental.pallas import tpu as pltpu

PACK = 8  # samples packed per lane-row; 8*10 = 80 lanes <= 128


def mlp_kernel(x_ref, w1_ref, b1_ref, w2_ref, b2_ref, o_ref):
    # x_ref: (TR, 80) -- 8 packed samples per sublane row (batch on sublanes,
    # packed features on lanes; no HBM transpose was needed to get here).
    x = x_ref[...]
    # fc1 for all 8 packed samples at once via the block-diagonal (80, 40) weight.
    h = jnp.dot(x, w1_ref[...], preferred_element_type=jnp.float32) + b1_ref[...]
    # sigmoid runs on the EUP (transcendental) slot; VALU stays free.
    h = jax.nn.sigmoid(h)
    # fc2 via the block-diagonal (40, 16) weight; bias broadcasts over sublanes.
    o_ref[...] = (
        jnp.dot(h, w2_ref[...], preferred_element_type=jnp.float32) + b2_ref[...]
    )


def net_forward(x, w1, b1, w2, b2, *, tile_rows=4096):
    """Pallas forward for Net: sigmoid(x @ w1.T + b1) @ w2.T + b2.

    x  : (B, 10) float32
    w1 : (5, 10) float32   (PyTorch nn.Linear(10, 5).weight layout)
    b1 : (5,)    float32
    w2 : (2, 5)  float32   (PyTorch nn.Linear(5, 2).weight layout)
    b2 : (2,)    float32
    returns (B, 2) float32
    """
    B, d_in = x.shape
    d_hid = w1.shape[0]
    d_out = w2.shape[0]

    # Pad the batch up to a multiple of PACK (copies x only when B % 8 != 0).
    b_pad = pl.cdiv(B, PACK) * PACK
    if b_pad != B:
        x = jnp.pad(x, ((0, b_pad - B), (0, 0)))
    rows = b_pad // PACK

    # Free row-major reshape: (b_pad, 10) -> (rows, 80). No transpose, no copy.
    xp = x.reshape(rows, PACK * d_in)

    # Tiny packed parameters (~15 KiB total, built once):
    #   w1p[10g+k, 5g+j] = w1[j, k]   (8-way block diagonal of w1.T)
    #   w2p[5g+j, 2g+m]  = w2[m, j]   (8-way block diagonal of w2.T)
    eye = jnp.eye(PACK, dtype=x.dtype)
    w1p = jnp.kron(eye, jnp.transpose(w1).astype(x.dtype))        # (80, 40)
    w2p = jnp.kron(eye, jnp.transpose(w2).astype(x.dtype))        # (40, 16)
    b1p = jnp.tile(b1, PACK).reshape(1, PACK * d_hid)             # (1, 40)
    b2p = jnp.tile(b2, PACK).reshape(1, PACK * d_out)             # (1, 16)

    # Large batch tile (32768 samples by default).  A ragged last block is
    # fine: out-of-bounds rows are never stored by Pallas.
    tr = min(tile_rows, rows)
    n_tiles = pl.cdiv(rows, tr)

    outp = pl.pallas_call(
        mlp_kernel,
        out_shape=jax.ShapeDtypeStruct((rows, PACK * d_out), jnp.float32),
        grid=(n_tiles,),
        in_specs=[
            # x: batch-row tiled, auto double-buffered, contiguous HBM blocks.
            pl.BlockSpec((tr, PACK * d_in), lambda i: (i, 0)),
            # Packed weights / biases: constant block index -> VMEM-resident.
            pl.BlockSpec((PACK * d_in, PACK * d_hid), lambda i: (0, 0)),
            pl.BlockSpec((1, PACK * d_hid), lambda i: (0, 0)),
            pl.BlockSpec((PACK * d_hid, PACK * d_out), lambda i: (0, 0)),
            pl.BlockSpec((1, PACK * d_out), lambda i: (0, 0)),
        ],
        out_specs=pl.BlockSpec((tr, PACK * d_out), lambda i: (i, 0)),
        compiler_params=pltpu.CompilerParams(
            # Independent batch tiles -> shard across TensorCores on v7x.
            dimension_semantics=("parallel",),
            # Headroom for the large double-buffered tiles (fits v5e/v6e/v7x).
            vmem_limit_bytes=64 * 1024 * 1024,
        ),
    )(xp, w1p, b1p, w2p, b2p)

    # Free reshape back to (b_pad, 2); strip batch padding if any.
    out = outp.reshape(b_pad, d_out)
    return out[:B] if b_pad != B else out


def _ref_forward(x, w1, b1, w2, b2):
    """Pure-JAX reference matching PyTorch semantics (high-precision dots)."""
    h = jax.nn.sigmoid(
        jnp.dot(x, w1.T, precision=jax.lax.Precision.HIGHEST) + b1)
    return jnp.dot(h, w2.T, precision=jax.lax.Precision.HIGHEST) + b2


if __name__ == "__main__":
    key = jax.random.PRNGKey(0)
    k_x, k_w1, k_b1, k_w2, k_b2 = jax.random.split(key, 5)

    B = 8
    x = jax.random.normal(k_x, (B, 10), dtype=jnp.float32)

    # Deterministic parameter init (shapes from nn.Linear(10,5) / nn.Linear(5,2)).
    w1 = jax.random.normal(k_w1, (5, 10), dtype=jnp.float32) * 0.1
    b1 = jax.random.normal(k_b1, (5,), dtype=jnp.float32) * 0.1
    w2 = jax.random.normal(k_w2, (2, 5), dtype=jnp.float32) * 0.1
    b2 = jax.random.normal(k_b2, (2,), dtype=jnp.float32) * 0.1

    out = jax.block_until_ready(net_forward(x, w1, b1, w2, b2))
    ref = _ref_forward(x, w1, b1, w2, b2)

    assert out.shape == (B, 2), out.shape
    # 1e-3 tolerance covers any reduced-precision MXU passes; a packing/layout
    # bug would show up as O(0.1-1) errors.
    assert jnp.allclose(out, ref, atol=1e-3, rtol=1e-3), "mismatch vs reference"

    print("KERNEL_OK")
</pallas_src>

<mosaic_0001>
module attributes {stable_mosaic.version = 11 : i64} {
  func.func @mlp_kernel(%arg0: i32, %arg1: memref<1x80xf32, #tpu.memory_space<vmem>>, %arg2: memref<80x40xf32, #tpu.memory_space<vmem>>, %arg3: memref<1x40xf32, #tpu.memory_space<vmem>>, %arg4: memref<40x16xf32, #tpu.memory_space<vmem>>, %arg5: memref<1x16xf32, #tpu.memory_space<vmem>>, %arg6: memref<1x16xf32, #tpu.memory_space<vmem>>) attributes {dimension_semantics = [#tpu.dimension_semantics<parallel>], iteration_bounds = array<i64: 1>, scalar_prefetch = 0 : i64, scratch_operands = 0 : i64, tpu.core_type = #tpu.core_type<tc>, window_params = [{transform_indices = @transform_0, window_bounds = array<i64: 1, 80>}, {pipeline_mode = #tpu.pipeline_mode<synchronous>, transform_indices = @transform_1, window_bounds = array<i64: 80, 40>}, {pipeline_mode = #tpu.pipeline_mode<synchronous>, transform_indices = @transform_2, window_bounds = array<i64: 1, 40>}, {pipeline_mode = #tpu.pipeline_mode<synchronous>, transform_indices = @transform_3, window_bounds = array<i64: 40, 16>}, {pipeline_mode = #tpu.pipeline_mode<synchronous>, transform_indices = @transform_4, window_bounds = array<i64: 1, 16>}, {transform_indices = @transform_5, window_bounds = array<i64: 1, 16>}]} {
    %c0 = arith.constant 0 : index
    %c0_0 = arith.constant 0 : index
    %0 = vector.load %arg1[%c0, %c0_0] : memref<1x80xf32, #tpu.memory_space<vmem>>, vector<1x80xf32>
    %c0_1 = arith.constant 0 : index
    %c0_2 = arith.constant 0 : index
    %1 = vector.load %arg2[%c0_1, %c0_2] : memref<80x40xf32, #tpu.memory_space<vmem>>, vector<80x40xf32>
    %cst = arith.constant dense<0.000000e+00> : vector<1x40xf32>
    %2 = tpu.matmul %0, %1, %cst {dimension_numbers = #tpu.dot_dimension_numbers<[1], [0], [0], [1], [0, 0, 1, 1], [], []>} : vector<1x80xf32>, vector<80x40xf32>, vector<1x40xf32> -> vector<1x40xf32>
    %c0_3 = arith.constant 0 : index
    %c0_4 = arith.constant 0 : index
    %3 = vector.load %arg3[%c0_3, %c0_4] : memref<1x40xf32, #tpu.memory_space<vmem>>, vector<1x40xf32>
    %4 = arith.addf %2, %3 : vector<1x40xf32>
    %5 = arith.negf %4 : vector<1x40xf32>
    %6 = math.exp %5 : vector<1x40xf32>
    %cst_5 = arith.constant 1.000000e+00 : f32
    %7 = vector.broadcast %cst_5 : f32 to vector<1x40xf32>
    %8 = arith.addf %7, %6 : vector<1x40xf32>
    %9 = arith.divf %7, %8 : vector<1x40xf32>
    %c0_6 = arith.constant 0 : index
    %c0_7 = arith.constant 0 : index
    %10 = vector.load %arg4[%c0_6, %c0_7] : memref<40x16xf32, #tpu.memory_space<vmem>>, vector<40x16xf32>
    %cst_8 = arith.constant dense<0.000000e+00> : vector<1x16xf32>
    %11 = tpu.matmul %9, %10, %cst_8 {dimension_numbers = #tpu.dot_dimension_numbers<[1], [0], [0], [1], [0, 0, 1, 1], [], []>} : vector<1x40xf32>, vector<40x16xf32>, vector<1x16xf32> -> vector<1x16xf32>
    %c0_9 = arith.constant 0 : index
    %c0_10 = arith.constant 0 : index
    %12 = vector.load %arg5[%c0_9, %c0_10] : memref<1x16xf32, #tpu.memory_space<vmem>>, vector<1x16xf32>
    %13 = arith.addf %11, %12 : vector<1x16xf32>
    %c0_11 = arith.constant 0 : index
    %c0_12 = arith.constant 0 : index
    %14 = vector.load %arg6[%c0_11, %c0_12] : memref<1x16xf32, #tpu.memory_space<vmem>>, vector<1x16xf32>
    tpu.vector_store %arg6[%c0_11, %c0_12], %13 {strides = array<i32>} : memref<1x16xf32, #tpu.memory_space<vmem>>, vector<1x16xf32>,
    return
  }
  func.func @transform_0(%arg0: i32) -> (i32, i32) {
    %c0_i32 = arith.constant 0 : i32
    %c0_i32_0 = arith.constant 0 : i32
    return %arg0, %c0_i32 : i32, i32
  }
  func.func @transform_1(%arg0: i32) -> (i32, i32) {
    %c0_i32 = arith.constant 0 : i32
    %c0_i32_0 = arith.constant 0 : i32
    %c0_i32_1 = arith.constant 0 : i32
    return %c0_i32, %c0_i32_0 : i32, i32
  }
  func.func @transform_2(%arg0: i32) -> (i32, i32) {
    %c0_i32 = arith.constant 0 : i32
    %c0_i32_0 = arith.constant 0 : i32
    %c0_i32_1 = arith.constant 0 : i32
    return %c0_i32, %c0_i32_0 : i32, i32
  }
  func.func @transform_3(%arg0: i32) -> (i32, i32) {
    %c0_i32 = arith.constant 0 : i32
    %c0_i32_0 = arith.constant 0 : i32
    %c0_i32_1 = arith.constant 0 : i32
    return %c0_i32, %c0_i32_0 : i32, i32
  }
  func.func @transform_4(%arg0: i32) -> (i32, i32) {
    %c0_i32 = arith.constant 0 : i32
    %c0_i32_0 = arith.constant 0 : i32
    %c0_i32_1 = arith.constant 0 : i32
    return %c0_i32, %c0_i32_0 : i32, i32
  }
  func.func @transform_5(%arg0: i32) -> (i32, i32) {
    %c0_i32 = arith.constant 0 : i32
    %c0_i32_0 = arith.constant 0 : i32
    return %arg0, %c0_i32 : i32, i32
  }
}

</mosaic_0001>

<bundles_post_ra>
// kernel: tpu_custom_call.1
= control target key start
LH: loop header
LB: loop body
LE: loop exit
PB: predicated region body
PF: predicated region fallthrough
CT: control target
= control target key end

     0   :  { %10 = vsyncpa [#allocation3], 0  ;;  %s619_s0 = inlined_call_operand.hbm [shape: f32[1,80], index: 0, kind: input, shape index: {}]   ;;  %s620_s1 = inlined_call_operand.hbm [shape: f32[80,40], index: 1, kind: input, shape index: {}]   ;;  %s621_s2 = inlined_call_operand.hbm [shape: f32[1,40], index: 2, kind: input, shape index: {}]   ;;  %s622_s3 = inlined_call_operand.hbm [shape: f32[40,16], index: 3, kind: input, shape index: {}]   ;;  %s623_s4 = inlined_call_operand.hbm [shape: f32[1,16], index: 4, kind: input, shape index: {}]   ;;  %s624_s5 = inlined_call_operand.hbm [shape: f32[1,16], index: 5, kind: output, shape index: {}]  }
   0x1   :  { %11 = vsyncpa [#allocation6], 0 }
   0x2   :  { %12 = vsyncpa [#allocation9], 0 }
   0x3   :  { %13 = vsyncpa [#allocation4], 0  ;;  %s506_s18 = smov [#allocation5]   ;;  %s366_s22 = scalar_lea.hbm %s620_s1, 1280 }
   0x4   :  { %s29_s19 = sshll.u32 %s506_s18, 4  ;;  %p367_p0 = scmp.ne.s32.totalorder %s620_s1, %s366_s22  ;;  %s30_s19 = int_to_ptr.vmem [resolvable:$true] %s29_s19 }
   0x5   :  { %p370_p1 = scmp.lt.u32.totalorder %s366_s22, %s620_s1 }
   0x7   :  { %p372_p2 = pnand %p370_p1, %p367_p0 }
   0x9   :  { %375 = shalt.err (!%p372_p2)
}
   0xa   :  { %s376_s27 = scalar_lea.vmem %s30_s19, 1280  ;;  %p381_p4 = scmp.lt.s32.totalorder %s30_s19, %s30_s19 }
   0xb   :  { %p377_p3 = scmp.ne.s32.totalorder %s30_s19, %s376_s27  ;;  %p382_p5 = scmp.lt.s32.totalorder %s376_s27, %s376_s27 }
   0xd   :  { %p383_p6 = por %p382_p5, %p381_p4 }
   0xf   :  { %p384_p7 = pnand %p383_p6, %p377_p3 }
  0x11   :  { %387 = shalt.err (!%p384_p7)
}
  0x12   :  { %s507_s28 = smov 128   ;;  %s508_s29 = smov 8  }
  0x13   :  { %35 = dma.hbm_to_vmem [thread:$0]  %s620_s1, 1280, %s30_s19, [#allocation6], %s507_s28, %s507_s28, %s508_s29  }
  0x14   :  { %s509_s7 = smov [#allocation8]   ;;  %s510_s9 = smov [#allocation2]  }
  0x15   :  { %s51_s8 = sshll.u32 %s509_s7, 4  ;;  %s20_s10 = sshll.u32 %s510_s9, 4  ;;  %s52_s8 = int_to_ptr.vmem [resolvable:$true] %s51_s8  ;;  %s21_s10 = int_to_ptr.vmem [resolvable:$true] %s20_s10 }
  0x16   :  { %s388_s13 = scalar_lea.hbm %s622_s3, 640 }
  0x17   :  { %p389_p8 = scmp.ne.s32.totalorder %s622_s3, %s388_s13  ;;  %p392_p9 = scmp.lt.u32.totalorder %s388_s13, %s622_s3 }
  0x19   :  { %p394_p10 = pnand %p392_p9, %p389_p8 }
  0x1b   :  { %397 = shalt.err (!%p394_p10)
}
  0x1c   :  { %s398_s1 = scalar_lea.vmem %s52_s8, 640  ;;  %p403_p12 = scmp.lt.s32.totalorder %s52_s8, %s52_s8 }
  0x1d   :  { %p399_p11 = scmp.ne.s32.totalorder %s52_s8, %s398_s1  ;;  %p404_p13 = scmp.lt.s32.totalorder %s398_s1, %s398_s1 }
  0x1f   :  { %p405_p0 = por %p404_p13, %p403_p12 }
  0x21   :  { %p406_p1 = pnand %p405_p0, %p399_p11 }
  0x23   :  { %409 = shalt.err (!%p406_p1)
}
  0x24   :  { %57 = dma.hbm_to_vmem [thread:$0]  %s622_s3, 640, %s52_s8, [#allocation9], %s507_s28, %s507_s28, %s508_s29  }
  0x25   :  { %s410_s22 = scalar_lea.hbm %s619_s0, 16 }
  0x26   :  { %p411_p2 = scmp.ne.s32.totalorder %s619_s0, %s410_s22  ;;  %p414_p3 = scmp.lt.u32.totalorder %s410_s22, %s619_s0 }
  0x28   :  { %p416_p4 = pnand %p414_p3, %p411_p2 }
  0x2a   :  { %419 = shalt.err (!%p416_p4)
}
  0x2b   :  { %s420_s27 = scalar_lea.vmem %s21_s10, 16  ;;  %s424_s30 = scalar_lea.vmem %s21_s10, 32 }
  0x2c   :  { %p421_p5 = scmp.ne.s32.totalorder %s21_s10, %s420_s27  ;;  %p425_p6 = scmp.lt.s32.totalorder %s21_s10, %s21_s10 }
  0x2d   :  { %p426_p7 = scmp.lt.s32.totalorder %s424_s30, %s420_s27 }
  0x2f   :  { %p427_p8 = por %p426_p7, %p425_p6 }
  0x31   :  { %p428_p9 = pnand %p427_p8, %p421_p5 }
  0x33   :  { %431 = shalt.err (!%p428_p9)
}
  0x34   :  { %23 = dma.hbm_to_vmem [thread:$0]  %s619_s0, 16, %s21_s10, [#allocation3]  }
  0x35   :  { %s511_s29 = smov [#allocation7]   ;;  %s512_s7 = smov [#allocation10]  }
  0x36   :  { %s42_s6 = sshll.u32 %s511_s29, 4  ;;  %s64_s8 = sshll.u32 %s512_s7, 4  ;;  %s43_s6 = int_to_ptr.vmem [resolvable:$true] %s42_s6  ;;  %s65_s8 = int_to_ptr.vmem [resolvable:$true] %s64_s8 }
  0x37   :  { %s432_s12 = scalar_lea.hbm %s621_s2, 16 }
  0x38   :  { %p433_p10 = scmp.ne.s32.totalorder %s621_s2, %s432_s12  ;;  %p436_p11 = scmp.lt.u32.totalorder %s432_s12, %s621_s2 }
  0x3a   :  { %p438_p12 = pnand %p436_p11, %p433_p10 }
  0x3c   :  { %441 = shalt.err (!%p438_p12)
}
  0x3d   :  { %s442_s0 = scalar_lea.vmem %s43_s6, 16  ;;  %s446_s10 = scalar_lea.vmem %s43_s6, 32 }
  0x3e   :  { %p443_p13 = scmp.ne.s32.totalorder %s43_s6, %s442_s0  ;;  %p447_p0 = scmp.lt.s32.totalorder %s43_s6, %s43_s6 }
  0x3f   :  { %p448_p1 = scmp.lt.s32.totalorder %s446_s10, %s442_s0 }
  0x41   :  { %p449_p2 = por %p448_p1, %p447_p0 }
  0x43   :  { %p450_p3 = pnand %p449_p2, %p443_p13 }
  0x45   :  { %453 = shalt.err (!%p450_p3)
}
  0x46   :  { %45 = dma.hbm_to_vmem [thread:$0]  %s621_s2, 16, %s43_s6, [#allocation6]  }
  0x47   :  { %s454_s20 = scalar_lea.hbm %s623_s4, 16 }
  0x48   :  { %p455_p4 = scmp.ne.s32.totalorder %s623_s4, %s454_s20  ;;  %p458_p5 = scmp.lt.u32.totalorder %s454_s20, %s623_s4 }
  0x4a   :  { %p460_p6 = pnand %p458_p5, %p455_p4 }
  0x4c   :  { %463 = shalt.err (!%p460_p6)
}
  0x4d   :  { %s464_s25 = scalar_lea.vmem %s65_s8, 16  ;;  %s468_s26 = scalar_lea.vmem %s65_s8, 32 }
  0x4e   :  { %p465_p7 = scmp.ne.s32.totalorder %s65_s8, %s464_s25  ;;  %p469_p8 = scmp.lt.s32.totalorder %s65_s8, %s65_s8 }
  0x4f   :  { %p470_p9 = scmp.lt.s32.totalorder %s468_s26, %s464_s25 }
  0x51   :  { %p471_p10 = por %p470_p9, %p469_p8 }
  0x53   :  { %p472_p11 = pnand %p471_p10, %p465_p7 }
  0x55   :  { %475 = shalt.err (!%p472_p11)
}
  0x56   :  { %67 = dma.hbm_to_vmem [thread:$0]  %s623_s4, 16, %s65_s8, [#allocation9]  }
  0x57   :  { %498 = dma.done.wait [#allocation3], 16  }
  0x58   :  { %499 = vsyncadd [#allocation3], 4294967280 }
  0x59   :  { %500 = dma.done.wait [#allocation6], 1296  }
  0x5a   :  { %501 = vsyncadd [#allocation6], 4294966000 }
  0x5b   :  { %502 = dma.done.wait [#allocation9], 656  }
  0x5c   :  { %503 = vsyncadd [#allocation9], 4294966640  ;;  %v513_v0 = vmov 0.0|0.0   ;;  %vm514_vm0 = vmmov 0   ;;  %v515_v1 = vmov 0.0   ;;  %v84_v2 = vld [vmem:[#allocation5] sm:$0xff] }
  0x5d   :  { %330 = vmatprep.subr.bf16.mxu0 %v513_v0  ;;  %314 = vmatprep.mubr.msk.f32.mxu0 %vm514_vm0, %v515_v1  ;;  %v85_v3 = vld [vmem:[#allocation5 + $0x8] sm:$0xff]  ;;  %v86_v4 = vld [vmem:[#allocation5 + $0x10] sm:$0xff]  ;;  %v87_v6 = vld [vmem:[#allocation5 + $0x18] sm:$0xff]  ;;  %vm95_vm1 = vcmask 654336   ;;  %vm181_vm2 = vcmask 326656   ;;  %s516_s4 = smov [#allocation11]  }
  0x5e   :  { %345 = vmatprep.subr.bf16.mxu1 %v513_v0  ;;  %327 = vmatprep.mubr.msk.f32.mxu1 %vm514_vm0, %v515_v1  ;;  %v331_v5 = vpack.c.bf16 %v85_v3, %v84_v2  ;;  %v334_v7 = vpack.c.bf16 %v87_v6, %v86_v4  ;;  %v88_v8 = vld [vmem:[#allocation5 + $0x20] sm:$0xff]  ;;  %v89_v9 = vld [vmem:[#allocation5 + $0x28] sm:$0xff]  ;;  %v90_v11 = vld [vmem:[#allocation5 + $0x30] sm:$0xff]  ;;  %s263_s30 = sshll.u32 %s516_s4, 4  ;;  %vm255_vm3 = vcmask 122880   ;;  %s264_s30 = int_to_ptr.vmem [resolvable:$true] %s263_s30 }
  0x5f   :  { %v337_v10 = vpack.c.bf16 %v89_v9, %v88_v8  ;;  %v91_v12 = vld [vmem:[#allocation5 + $0x38] sm:$0xff]  ;;  %v92_v14 = vld [vmem:[#allocation5 + $0x40] sm:$0xff]  ;;  %v93_v15 = vld [vmem:[#allocation5 + $0x48] sm:$0xff]  ;;  %s476_s3 = scalar_lea.vmem %s264_s30, 16  ;;  %s480_s28 = scalar_lea.vmem %s264_s30, 32 }
  0x60   :  { %332 = vmatpush3.bf16.msra.mxu0 %v331_v5  ;;  %v340_v13 = vpack.c.bf16 %v91_v12, %v90_v11  ;;  %v343_v16 = vpack.c.bf16 %v93_v15, %v92_v14  ;;  %v83_v17 = vld [vmem:[#allocation2] sm:$0x1]  ;;  %v175_v18 = vld [vmem:[#allocation8] sm:$0xff]  ;;  %v177_v21 = vld [vmem:[#allocation8 + $0x10] sm:$0xff]  ;;  %p477_p12 = scmp.ne.s32.totalorder %s264_s30, %s476_s3  ;;  %p481_p13 = scmp.lt.s32.totalorder %s264_s30, %s264_s30 }
  0x61   :  { %333 = vmatprep.subr.bf16.mxu0 %v513_v0  ;;  %v176_v19 = vld [vmem:[#allocation8 + $0x8] sm:$0xff]  ;;  %v178_v22 = vld [vmem:[#allocation8 + $0x18] sm:$0xff]  ;;  %v179_v24 = vld [vmem:[#allocation8 + $0x20] sm:$0xff]  ;;  %p482_p0 = scmp.lt.s32.totalorder %s480_s28, %s476_s3 }
  0x62   :  { %v346_v20 = vpack.c.bf16 %v176_v19, %v175_v18  ;;  %v349_v23 = vpack.c.bf16 %v178_v22, %v177_v21  ;;  %v94_v25 = vld [vmem:[#allocation7] sm:$0x1]  ;;  %v180_v33 = vld [vmem:[#allocation10] sm:$0x1] }
  0x63   :  { %p483_p1 = por %p482_p0, %p481_p13 }
  0x64   :  { %335 = vmatpush3.bf16.msra.mxu0 %v334_v7  ;;  %347 = vmatpush3.bf16.msra.mxu1 %v346_v20 }
  0x65   :  { %336 = vmatprep.subr.bf16.mxu0 %v513_v0  ;;  %348 = vmatprep.subr.bf16.mxu1 %v513_v0  ;;  %p484_p2 = pnand %p483_p1, %p477_p12 }
  0x68   :  { %338 = vmatpush3.bf16.msra.mxu0 %v337_v10  ;;  %350 = vmatpush3.bf16.msra.mxu1 %v349_v23 }
  0x69   :  { %339 = vmatprep.subr.bf16.mxu0 %v513_v0  ;;  %325 = vmatprep.subr.mxu1 %v515_v1 }
  0x6c   :  { %341 = vmatpush3.bf16.msra.mxu0 %v340_v13  ;;  %326 = vmatpush3.msra.mxu1 %v179_v24 }
  0x6d   :  { %342 = vmatprep.subr.bf16.mxu0 %v513_v0 }
  0x70   :  { %344 = vmatpush3.bf16.msra.mxu0 %v343_v16 }
  0x73   :  { %315 = vmatmul.mubr.msk.f32.vlgmr.msra.gmra.mrb[0].mxu0 %vm95_vm1, %v83_v17 }
 0x146   :  { %v165_v26 = vpop.f32.mrb[0].mxu0 }
 0x147   :  { %v166_v27 = vadd.f32 %v165_v26, %v94_v25  ;;  %v316_v28 = vpop.f32.mrb[1].mxu0 }
 0x149   :  { %v275_v29 = vmul.f32 -1.442695, %v166_v27 }
 0x14b   :  { %362 = vpow2.f32 %v275_v29 }
 0x155   :  { %v363_v30 = vpop.eup %362 }
 0x156   :  { %v172_v31 = vadd.f32 1.0, %v363_v30 }
 0x158   :  { %364 = vrcp.f32 %v172_v31 }
 0x162   :  { %v365_v32 = vpop.eup %364 }
 0x163   :  { %328 = vmatmul.mubr.msk.f32.vlgmr.msra.gmra.mrb[0].mxu1 %vm181_vm2, %v365_v32 }
 0x236   :  { %v251_v34 = vpop.f32.mrb[0].mxu1 }
 0x237   :  { %v252_v35 = vadd.f32 %v251_v34, %v180_v33  ;;  %v329_v36 = vpop.f32.mrb[1].mxu1 }
 0x239   :  { %256 = vst.msk [vmem:[#allocation11] sm:$0x1] %vm255_vm3, %v252_v35 }
 0x23a   :  { %487 = shalt.err (!%p484_p2)
}
 0x23b   :  { %s488_s7 = scalar_lea.hbm %s624_s5, 16 }
 0x23c   :  { %p489_p3 = scmp.ne.s32.totalorder %s624_s5, %s488_s7  ;;  %p492_p4 = scmp.lt.u32.totalorder %s488_s7, %s624_s5 }
 0x23e   :  { %p494_p5 = pnand %p492_p4, %p489_p3 }
 0x240   :  { %497 = shalt.err (!%p494_p5)
}
 0x241   :  { %266 = dma.vmem_to_hbm [thread:$0]  %s264_s30, 16, %s624_s5, [#allocation4]  }
 0x242   :  { %504 = dma.done.wait [#allocation4], 16  }
 0x243   :  { %505 = vsyncadd [#allocation4], 4294967280 }
 0x244   :  { %270 = vsyncpa [#allocation3], 1 }
 0x245   :  { %271 = vsyncpa [#allocation6], 1 }
 0x246   :  { %272 = vsyncpa [#allocation9], 1 }
 0x247   :  { %273 = vsyncpa [#allocation4], 1 }

</bundles_post_ra>
